<compile_context>
chip_gen: v7x
topology: tpu7x:2x2x1
jax: 0.10.0
libtpu: 0.0.40
codegen_flags: <defaults>
</compile_context>

<pallas_src>
import functools

import jax
import jax.numpy as jnp
from jax.experimental import pallas as pl
from jax.experimental.pallas import tpu as pltpu


def _proxy_anchor_kernel(xn_ref, pT_ref, t_ref, out_ref,
                         *, mrg, alpha, nb_classes, tile_c):
    j = pl.program_id(0)

    # cos = l2(X) @ l2(P).T for this class tile -> [N, tC]; bf16 in, f32 out (MXU).
    cos = jnp.dot(xn_ref[...], pT_ref[...], preferred_element_type=jnp.float32)

    # Positive mask from integer labels (no materialized one-hot, no [N,tC] iota):
    # (1, tC) class ids broadcast against [N, 1] labels.
    cls = j * tile_c + jax.lax.broadcasted_iota(jnp.int32, (1, tile_c), 1)  # [1, tC]
    labels = t_ref[...]                                                     # [N, 1]
    pos_mask = cls == labels                                                # [N, tC] bool

    # Negatives: exp over the whole tile, masked batch-sum per class.
    neg_exp = jnp.exp(alpha * (cos + mrg))
    n_sim_sum = jnp.sum(jnp.where(pos_mask, 0.0, neg_exp),
                        axis=0, keepdims=True)                              # [1, tC]

    # Positives: exactly one positive column per row -> only N exps per tile.
    cos_pos = jnp.sum(jnp.where(pos_mask, cos, 0.0),
                      axis=1, keepdims=True)                                # [N, 1]
    pos_exp = jnp.exp(-alpha * (cos_pos - mrg))                             # [N, 1]
    p_sim_sum = jnp.sum(jnp.where(pos_mask, pos_exp, 0.0),
                        axis=0, keepdims=True)                              # [1, tC]

    # Padded classes (id >= nb_classes) contribute 0 to every partial:
    #  - p_sim_sum == 0 there -> log1p == 0 and valid-indicator == 0,
    #  - negatives are explicitly masked below.
    in_range = cls < nb_classes                                             # [1, tC]

    out_ref[...] = jnp.concatenate(
        [
            jnp.log1p(p_sim_sum),                                           # pos log term
            jnp.where(in_range, jnp.log1p(n_sim_sum), 0.0),                 # neg log term
            (p_sim_sum > 0.0).astype(jnp.float32),                          # valid-proxy flag
        ],
        axis=0,
    )                                                                       # [3, tC]


def _pick_tile_c(N, C):
    # Lane-aligned class tiles (multiple of 128).  512 approaches the HBM
    # roofline; shrink to 256 for very large batches so the f32 [N, tC]
    # temporaries still fit v7x's 64 MiB VMEM with headroom.
    cap = 256 if N >= 2048 else 512
    return min(128 * pl.cdiv(C, 128), cap)


def _vmem_limit_bytes(N, D, tC):
    bf16, f32 = 2, 4
    # double-buffered inputs (+ lane-padded label block) + f32 [N,tC] temporaries
    inputs = 2 * (N * D * bf16 + D * tC * bf16 + N * 128 * f32)
    temps = 6 * N * tC * f32 + 2 * 3 * tC * f32
    est = inputs + temps
    # Clamp well below v7x's 64 MiB physical VMEM (128 MiB on v5e/v6e).
    return int(min(max(2 * est, 16 * 1024 * 1024), 40 * 1024 * 1024))


def proxy_anchor_loss(X, T, proxies, mrg=0.5, alpha=32.0):
    """Pallas implementation of Proxy_Anchor.forward(X, T)."""
    N, D = X.shape
    C = proxies.shape[0]
    # TODO(synk): sklearn label_binarize returns a single column for C==2;
    #             this implementation assumes standard one-hot semantics (C > 2).

    tC = _pick_tile_c(N, C)
    n_tiles = pl.cdiv(C, tC)
    C_pad = n_tiles * tC

    # Fused wrapper preprocessing: l2-normalize (matches torch l2_norm:
    # x / sqrt(sum(x^2) + 1e-12)), cast to bf16, transpose + zero-pad proxies.
    Xf = X.astype(jnp.float32)
    xn = (Xf * jax.lax.rsqrt(jnp.sum(Xf * Xf, axis=1, keepdims=True) + 1e-12)
          ).astype(jnp.bfloat16)
    Pf = proxies.astype(jnp.float32)
    pn = Pf * jax.lax.rsqrt(jnp.sum(Pf * Pf, axis=1, keepdims=True) + 1e-12)
    pT = jnp.pad(pn.T.astype(jnp.bfloat16), ((0, 0), (0, C_pad - C)))

    T2 = T.astype(jnp.int32).reshape(N, 1)

    kernel = functools.partial(
        _proxy_anchor_kernel,
        mrg=float(mrg), alpha=float(alpha), nb_classes=C, tile_c=tC)

    partials = pl.pallas_call(
        kernel,
        out_shape=jax.ShapeDtypeStruct((3, C_pad), jnp.float32),
        grid_spec=pltpu.PrefetchScalarGridSpec(
            num_scalar_prefetch=0,
            grid=(n_tiles,),
            in_specs=[
                pl.BlockSpec((N, D), lambda j: (0, 0)),    # normalized X (resident)
                pl.BlockSpec((D, tC), lambda j: (0, j)),   # normalized proxies^T tile
                pl.BlockSpec((N, 1), lambda j: (0, 0)),    # int labels (resident)
            ],
            out_specs=pl.BlockSpec((3, tC), lambda j: (0, j)),  # per-class partials
        ),
        compiler_params=pltpu.CompilerParams(
            dimension_semantics=("parallel",),             # tiles independent -> megacore OK
            vmem_limit_bytes=_vmem_limit_bytes(N, D, tC),
        ),
    )(xn, pT, T2)

    pos_log = jnp.sum(partials[0])
    neg_log = jnp.sum(partials[1])
    num_valid = jnp.sum(partials[2])
    return pos_log / num_valid + neg_log / float(C)


def _reference_loss(X, T, proxies, mrg=0.5, alpha=32.0):
    """Pure-JAX reference mirroring the PyTorch module (f32 throughout)."""
    nb_classes = proxies.shape[0]
    xn = X / jnp.sqrt(jnp.sum(X * X, axis=1, keepdims=True) + 1e-12)
    pn = proxies / jnp.sqrt(jnp.sum(proxies * proxies, axis=1, keepdims=True) + 1e-12)
    cos = xn @ pn.T
    oh = jax.nn.one_hot(T, nb_classes, dtype=jnp.float32)
    pos_exp = jnp.exp(-alpha * (cos - mrg))
    neg_exp = jnp.exp(alpha * (cos + mrg))
    p_sim = jnp.sum(jnp.where(oh == 1.0, pos_exp, 0.0), axis=0)
    n_sim = jnp.sum(jnp.where(oh == 1.0, 0.0, neg_exp), axis=0)
    num_valid = jnp.sum((jnp.sum(oh, axis=0) != 0.0).astype(jnp.float32))
    return jnp.sum(jnp.log1p(p_sim)) / num_valid + jnp.sum(jnp.log1p(n_sim)) / nb_classes


if __name__ == "__main__":
    nb_classes = 16
    sz_embed = 32
    batch = 8
    mrg = 0.5
    alpha = 32.0  # module hard-codes self.alpha = 32

    key = jax.random.PRNGKey(0)
    k_x, k_p, k_t = jax.random.split(key, 3)

    # embeddings X: [N, D]
    X = jax.random.normal(k_x, (batch, sz_embed), dtype=jnp.float32)
    # proxies: kaiming_normal_(mode='fan_out') on [C, D] -> std = sqrt(2 / C)
    proxies = jax.random.normal(k_p, (nb_classes, sz_embed), dtype=jnp.float32) * jnp.sqrt(
        2.0 / nb_classes)
    # integer labels T: [N]
    T = jax.random.randint(k_t, (batch,), 0, nb_classes, dtype=jnp.int32)

    loss = jax.block_until_ready(proxy_anchor_loss(X, T, proxies, mrg=mrg, alpha=alpha))
    ref = jax.block_until_ready(_reference_loss(X, T, proxies, mrg=mrg, alpha=alpha))

    # bf16 MXU inputs (f32 accumulate): |Δcos| ~ 1e-3, amplified by exp(alpha·);
    # log1p compresses it back to ~1% relative error on the loss.
    assert jnp.allclose(loss, ref, rtol=3e-2, atol=3e-2), (loss, ref)

    print("KERNEL_OK")
</pallas_src>

<mosaic_0001>
module attributes {stable_mosaic.version = 11 : i64} {
  func.func @_proxy_anchor_kernel(%arg0: i32, %arg1: memref<8x32xbf16, #tpu.memory_space<vmem>>, %arg2: memref<32x128xbf16, #tpu.memory_space<vmem>>, %arg3: memref<8x1xi32, #tpu.memory_space<vmem>>, %arg4: memref<3x128xf32, #tpu.memory_space<vmem>>) attributes {dimension_semantics = [#tpu.dimension_semantics<parallel>], iteration_bounds = array<i64: 1>, scalar_prefetch = 0 : i64, scratch_operands = 0 : i64, tpu.core_type = #tpu.core_type<tc>, window_params = [{pipeline_mode = #tpu.pipeline_mode<synchronous>, transform_indices = @transform_0, window_bounds = array<i64: 8, 32>}, {transform_indices = @transform_1, window_bounds = array<i64: 32, 128>}, {pipeline_mode = #tpu.pipeline_mode<synchronous>, transform_indices = @transform_2, window_bounds = array<i64: 8, 1>}, {transform_indices = @transform_3, window_bounds = array<i64: 3, 128>}]} {
    %c0 = arith.constant 0 : index
    %c0_0 = arith.constant 0 : index
    %0 = vector.load %arg1[%c0, %c0_0] : memref<8x32xbf16, #tpu.memory_space<vmem>>, vector<8x32xbf16>
    %c0_1 = arith.constant 0 : index
    %c0_2 = arith.constant 0 : index
    %1 = vector.load %arg2[%c0_1, %c0_2] : memref<32x128xbf16, #tpu.memory_space<vmem>>, vector<32x128xbf16>
    %cst = arith.constant dense<0.000000e+00> : vector<8x128xf32>
    %2 = tpu.matmul %0, %1, %cst {dimension_numbers = #tpu.dot_dimension_numbers<[1], [0], [0], [1], [0, 0, 1, 1], [], []>} : vector<8x32xbf16>, vector<32x128xbf16>, vector<8x128xf32> -> vector<8x128xf32>
    %c128_i32 = arith.constant 128 : i32
    %3 = arith.muli %arg0, %c128_i32 : i32
    %4 = tpu.iota {dimensions = array<i32: 1>} : vector<1x128xi32>
    %5 = vector.broadcast %3 : i32 to vector<1x128xi32>
    %6 = arith.addi %5, %4 : vector<1x128xi32>
    %c0_3 = arith.constant 0 : index
    %c0_4 = arith.constant 0 : index
    %7 = vector.load %arg3[%c0_3, %c0_4] : memref<8x1xi32, #tpu.memory_space<vmem>>, vector<8x1xi32>
    %8 = vector.broadcast %6 : vector<1x128xi32> to vector<8x128xi32>
    %9 = vector.broadcast %7 : vector<8x1xi32> to vector<8x128xi32>
    %10 = arith.cmpi eq, %8, %9 : vector<8x128xi32>
    %cst_5 = arith.constant 5.000000e-01 : f32
    %11 = vector.broadcast %cst_5 : f32 to vector<8x128xf32>
    %12 = arith.addf %2, %11 : vector<8x128xf32>
    %cst_6 = arith.constant 3.200000e+01 : f32
    %13 = vector.broadcast %cst_6 : f32 to vector<8x128xf32>
    %14 = arith.mulf %13, %12 : vector<8x128xf32>
    %15 = math.exp %14 : vector<8x128xf32>
    %cst_7 = arith.constant 0.000000e+00 : f32
    %16 = vector.broadcast %cst_7 : f32 to vector<8x128xf32>
    %17 = arith.select %10, %16, %15 : vector<8x128xi1>, vector<8x128xf32>
    %cst_8 = arith.constant dense<0.000000e+00> : vector<128xf32>
    %18 = vector.multi_reduction <add>, %17, %cst_8 [0] : vector<8x128xf32> to vector<128xf32>
    %19 = vector.shape_cast %18 : vector<128xf32> to vector<1x128xf32>
    %cst_9 = arith.constant 0.000000e+00 : f32
    %20 = vector.broadcast %cst_9 : f32 to vector<8x128xf32>
    %21 = arith.select %10, %2, %20 : vector<8x128xi1>, vector<8x128xf32>
    %cst_10 = arith.constant dense<0.000000e+00> : vector<8xf32>
    %22 = vector.multi_reduction <add>, %21, %cst_10 [1] : vector<8x128xf32> to vector<8xf32>
    %23 = vector.shape_cast %22 : vector<8xf32> to vector<8x1xf32>
    %cst_11 = arith.constant 5.000000e-01 : f32
    %24 = vector.broadcast %cst_11 : f32 to vector<8x1xf32>
    %25 = arith.subf %23, %24 : vector<8x1xf32>
    %cst_12 = arith.constant -3.200000e+01 : f32
    %26 = vector.broadcast %cst_12 : f32 to vector<8x1xf32>
    %27 = arith.mulf %26, %25 : vector<8x1xf32>
    %28 = math.exp %27 : vector<8x1xf32>
    %cst_13 = arith.constant 0.000000e+00 : f32
    %29 = vector.shape_cast %28 : vector<8x1xf32> to vector<8x1xf32>
    %30 = vector.broadcast %29 : vector<8x1xf32> to vector<8x128xf32>
    %31 = vector.broadcast %cst_13 : f32 to vector<8x128xf32>
    %32 = arith.select %10, %30, %31 : vector<8x128xi1>, vector<8x128xf32>
    %cst_14 = arith.constant dense<0.000000e+00> : vector<128xf32>
    %33 = vector.multi_reduction <add>, %32, %cst_14 [0] : vector<8x128xf32> to vector<128xf32>
    %34 = vector.shape_cast %33 : vector<128xf32> to vector<1x128xf32>
    %c16_i32 = arith.constant 16 : i32
    %35 = vector.broadcast %c16_i32 : i32 to vector<1x128xi32>
    %36 = arith.cmpi slt, %6, %35 : vector<1x128xi32>
    %37 = math.log1p %34 : vector<1x128xf32>
    %38 = math.log1p %19 : vector<1x128xf32>
    %cst_15 = arith.constant 0.000000e+00 : f32
    %39 = vector.broadcast %cst_15 : f32 to vector<1x128xf32>
    %40 = arith.select %36, %38, %39 : vector<1x128xi1>, vector<1x128xf32>
    %cst_16 = arith.constant 0.000000e+00 : f32
    %41 = vector.broadcast %cst_16 : f32 to vector<1x128xf32>
    %42 = arith.cmpf ogt, %34, %41 : vector<1x128xf32>
    %43 = arith.extui %42 : vector<1x128xi1> to vector<1x128xi32>
    %44 = arith.sitofp %43 : vector<1x128xi32> to vector<1x128xf32>
    %45 = tpu.concatenate %37, %40, %44 in 0 : vector<1x128xf32>, vector<1x128xf32>, vector<1x128xf32> -> vector<3x128xf32>
    %c0_17 = arith.constant 0 : index
    %c0_18 = arith.constant 0 : index
    %46 = vector.load %arg4[%c0_17, %c0_18] : memref<3x128xf32, #tpu.memory_space<vmem>>, vector<3x128xf32>
    tpu.vector_store %arg4[%c0_17, %c0_18], %45 {strides = array<i32>} : memref<3x128xf32, #tpu.memory_space<vmem>>, vector<3x128xf32>,
    return
  }
  func.func @transform_0(%arg0: i32) -> (i32, i32) {
    %c0_i32 = arith.constant 0 : i32
    %c0_i32_0 = arith.constant 0 : i32
    %c0_i32_1 = arith.constant 0 : i32
    return %c0_i32, %c0_i32_0 : i32, i32
  }
  func.func @transform_1(%arg0: i32) -> (i32, i32) {
    %c0_i32 = arith.constant 0 : i32
    %c0_i32_0 = arith.constant 0 : i32
    return %c0_i32, %arg0 : i32, i32
  }
  func.func @transform_2(%arg0: i32) -> (i32, i32) {
    %c0_i32 = arith.constant 0 : i32
    %c0_i32_0 = arith.constant 0 : i32
    %c0_i32_1 = arith.constant 0 : i32
    return %c0_i32, %c0_i32_0 : i32, i32
  }
  func.func @transform_3(%arg0: i32) -> (i32, i32) {
    %c0_i32 = arith.constant 0 : i32
    %c0_i32_0 = arith.constant 0 : i32
    return %c0_i32, %arg0 : i32, i32
  }
}

</mosaic_0001>

<bundles_post_ra>
// kernel: tpu_custom_call.1
= control target key start
LH: loop header
LB: loop body
LE: loop exit
PB: predicated region body
PF: predicated region fallthrough
CT: control target
= control target key end

     0   :  { %8 = vsyncpa [#allocation3], 0  ;;  %s315_s0 = inlined_call_operand.vmem [shape: bf16[8,32], index: 0, kind: input, shape index: {}]   ;;  %s316_s1 = inlined_call_operand.hbm [shape: bf16[32,128], index: 1, kind: input, shape index: {}]   ;;  %s317_s2 = inlined_call_operand.vmem [shape: s32[8,1], index: 2, kind: input, shape index: {}]   ;;  %s318_s3 = inlined_call_operand.hbm [shape: f32[3,128], index: 3, kind: output, shape index: {}]  }
   0x1   :  { %9 = vsyncpa [#allocation4], 0  ;;  %s251_s12 = smov [#allocation2]   ;;  %s203_s16 = scalar_lea.hbm %s316_s1, 256 }
   0x2   :  { %s17_s13 = sshll.u32 %s251_s12, 4  ;;  %p204_p0 = scmp.ne.s32.totalorder %s316_s1, %s203_s16  ;;  %s18_s13 = int_to_ptr.vmem [resolvable:$true] %s17_s13 }
   0x3   :  { %p207_p1 = scmp.lt.u32.totalorder %s203_s16, %s316_s1 }
   0x5   :  { %p209_p2 = pnand %p207_p1, %p204_p0 }
   0x7   :  { %212 = shalt.err (!%p209_p2)
}
   0x8   :  { %s213_s21 = scalar_lea.vmem %s18_s13, 256  ;;  %p218_p4 = scmp.lt.s32.totalorder %s18_s13, %s18_s13 }
   0x9   :  { %p214_p3 = scmp.ne.s32.totalorder %s18_s13, %s213_s21  ;;  %p219_p5 = scmp.lt.s32.totalorder %s213_s21, %s213_s21 }
   0xb   :  { %p220_p6 = por %p219_p5, %p218_p4 }
   0xd   :  { %p221_p7 = pnand %p220_p6, %p214_p3 }
   0xf   :  { %224 = shalt.err (!%p221_p7)
}
  0x10   :  { %s252_s22 = smov 64   ;;  %s253_s23 = smov 4  }
  0x11   :  { %23 = dma.hbm_to_vmem [thread:$0]  %s316_s1, 256, %s18_s13, [#allocation3], %s252_s22, %s252_s22, %s253_s23  }
  0x12   :  { %247 = dma.done.wait [#allocation3], 256  }
  0x13   :  { %248 = vsyncadd [#allocation3], 4294967040  ;;  %v254_v0 = vmov 0.0   ;;  %vm255_vm0 = vmmov 0   ;;  %v256_v1 = vmov 0   ;;  %v193_v2 = vld [vmem:[#allocation2] sm:$0xff]   ;;  %v92_v6 = vlaneseq }
  0x14   :  { %177 = vmatprep.subr.bf16.mxu0 %v254_v0  ;;  %181 = vmatprep.mubr.msk.bf16.mxu0 %vm255_vm0, %v254_v0  ;;  %v194_v3 = vld [vmem:[#allocation2 + $0x8] sm:$0xff]   ;;  %v96_v4 = vld [vmem:[%s317_s2] sm:$0xff]  ;;  %vm47_vm1 = vcmask 261120   ;;  %vm149_vm6 = vcmask 1040384   ;;  %vm151_vm8 = vcmask 1041408  }
  0x15   :  { %192 = vset.pattern.permute.xlu0 %v256_v1  ;;  %178 = vmatpush3.bf16.msra.mxu0 %v193_v2  ;;  %v30_v5 = vld [vmem:[%s315_s0] sm:$0xf]  ;;  %v93_v7 = vand.u32 127, %v92_v6  ;;  %s257_s0 = smov [#allocation5]  }
  0x16   :  { %179 = vmatprep.subr.bf16.mxu0 %v254_v0  ;;  %98 = vperm.xlu0 %192, %v96_v4   ;;  %s160_s2 = sshll.u32 %s257_s0, 4  ;;  %s161_s2 = int_to_ptr.vmem [resolvable:$true] %s160_s2 }
  0x17   :  { %vm126_vm4 = vcmp.lt.s32.totalorder %v93_v7, 16  ;;  %s225_s29 = scalar_lea.vmem %s161_s2, 64  ;;  %p230_p9 = scmp.lt.s32.totalorder %s161_s2, %s161_s2 }
  0x18   :  { %p226_p8 = scmp.ne.s32.totalorder %s161_s2, %s225_s29  ;;  %p231_p10 = scmp.lt.s32.totalorder %s225_s29, %s225_s29 }
  0x19   :  { %180 = vmatpush3.bf16.msra.mxu0 %v194_v3 }
  0x1a   :  { %p232_p11 = por %p231_p10, %p230_p9 }
  0x1c   :  { %182 = vmatmul.mubr.msk.bf16.vlgmr.msra.gmra.mrb[0].mxu0 %vm47_vm1, %v30_v5  ;;  %p233_p12 = pnand %p232_p11, %p226_p8 }
  0x95   :  { %v99_v8 = vpop.permute.xlu0 %98 }
  0x96   :  { %vm100_vm2 = vcmp.eq.s32.totalorder %v93_v7, %v99_v8 }
  0xef   :  { %v85_v9 = vpop.f32.mrb[0].mxu0 }
  0xf0   :  { %v183_v10 = vpop.f32.mrb[1].mxu0  ;;  %v112_v11 = vsel %vm100_vm2, %v85_v9, 0.0  ;;  %v101_v14 = vadd.f32 0.5, %v85_v9 }
  0xf1   :  { %113 = vadd.xlane.f32.xlu0 %v112_v11  ;;  %v88_v12 = vpop.f32.mrb[2].mxu0 }
  0xf2   :  { %v184_v13 = vpop.f32.mrb[3].mxu0  ;;  %v102_v15 = vmul.f32 32.0, %v101_v14 }
  0xf4   :  { %v103_v16 = vmul.f32 1.442695, %v102_v15 }
  0xf6   :  { %195 = vpow2.f32 %v103_v16 }
 0x100   :  { %v196_v17 = vpop.eup %195 }
 0x101   :  { %v105_v18 = vsel %vm100_vm2, 0.0, %v196_v17 }
 0x102   :  { %v106_v19 = vrot.slane %v105_v18, 4 }
 0x104   :  { %v107_v22 = vadd.f32 %v106_v19, %v105_v18 }
 0x106   :  { %v108_v25 = vrot.slane %v107_v22, 2 }
 0x108   :  { %v109_v26 = vadd.f32 %v108_v25, %v107_v22 }
 0x10a   :  { %v110_v27 = vrot.slane %v109_v26, 1 }
 0x10c   :  { %v111_v30 = vadd.f32 %v110_v27, %v109_v26 }
 0x10e   :  { %v136_v33 = vadd.f32 1.0, %v111_v30  ;;  %v139_v39 = vmul.f32 -0.5, %v111_v30  ;;  %v142_v43 = vand.u32 2147483647, %v111_v30 }
 0x110   :  { %v140_v42 = vadd.f32 1.0, %v139_v39  ;;  %vm143_vm3 = vcmp.lt.f32.partialorder %v142_v43, 0.0004427343 }
 0x112   :  { %v141_v47 = vmul.f32 %v140_v42, %v111_v30 }
 0x17e   :  { %v114_v20 = vpop.xlane.xlu0 %113 }
 0x17f   :  { %v172_v21 = vadd.f32 -0.5, %v114_v20 }
 0x181   :  { %v116_v23 = vmul.f32 -32.0, %v172_v21 }
 0x183   :  { %v117_v24 = vmul.f32 1.442695, %v116_v23 }
 0x185   :  { %197 = vpow2.f32 %v117_v24 }
 0x186   :  { %199 = vlog2.f32 %v136_v33 }
 0x18f   :  { %v198_v28 = vpop.eup %197 }
 0x190   :  { %v119_v29 = vsel %vm100_vm2, %v198_v28, 0.0  ;;  %v200_v40 = vpop.eup %199 }
 0x191   :  { %v120_v31 = vrot.slane %v119_v29, 4  ;;  %v138_v44 = vmul.f32 0.6931472, %v200_v40 }
 0x193   :  { %v121_v32 = vadd.f32 %v120_v31, %v119_v29  ;;  %v144_v49 = vsel %vm143_vm3, %v141_v47, %v138_v44 }
 0x194   :  { %v145_v53 = vsel %vm126_vm4, %v144_v49, 0.0 }
 0x195   :  { %v122_v34 = vrot.slane %v121_v32, 2 }
 0x197   :  { %v123_v35 = vadd.f32 %v122_v34, %v121_v32 }
 0x199   :  { %v124_v36 = vrot.slane %v123_v35, 1 }
 0x19b   :  { %v125_v37 = vadd.f32 %v124_v36, %v123_v35 }
 0x19d   :  { %v127_v38 = vadd.f32 1.0, %v125_v37  ;;  %v130_v41 = vmul.f32 -0.5, %v125_v37  ;;  %v133_v46 = vand.u32 2147483647, %v125_v37  ;;  %vm146_vm5 = vcmp.gt.f32.partialorder %v125_v37, 0.0 }
 0x19e   :  { %v173_v54 = vsel %vm146_vm5, 1.0, %v254_v0 }
 0x19f   :  { %201 = vlog2.f32 %v127_v38  ;;  %v131_v45 = vadd.f32 1.0, %v130_v41  ;;  %vm134_vm7 = vcmp.lt.f32.partialorder %v133_v46, 0.0004427343 }
 0x1a1   :  { %v132_v51 = vmul.f32 %v131_v45, %v125_v37 }
 0x1a9   :  { %v202_v48 = vpop.eup %201 }
 0x1aa   :  { %v129_v50 = vmul.f32 0.6931472, %v202_v48 }
 0x1ac   :  { %v135_v52 = vsel %vm134_vm7, %v132_v51, %v129_v50 }
 0x1ad   :  { %v150_v55 = vsel %vm149_vm6, %v135_v52, %v145_v53 }
 0x1ae   :  { %v152_v56 = vsel %vm151_vm8, %v150_v55, %v173_v54 }
 0x1af   :  { %153 = vst [vmem:[#allocation5] sm:$0x7] %v152_v56 }
 0x1b0   :  { %236 = shalt.err (!%p233_p12)
}
 0x1b1   :  { %s237_s5 = scalar_lea.hbm %s318_s3, 64 }
 0x1b2   :  { %p238_p13 = scmp.ne.s32.totalorder %s318_s3, %s237_s5  ;;  %p241_p0 = scmp.lt.u32.totalorder %s237_s5, %s318_s3 }
 0x1b4   :  { %p243_p1 = pnand %p241_p0, %p238_p13 }
 0x1b6   :  { %246 = shalt.err (!%p243_p1)
}
 0x1b7   :  { %163 = dma.vmem_to_hbm [thread:$0]  %s161_s2, 64, %s318_s3, [#allocation4]  }
 0x1b8   :  { %249 = dma.done.wait [#allocation4], 64  }
 0x1b9   :  { %250 = vsyncadd [#allocation4], 4294967232 }
 0x1ba   :  { %167 = vsyncpa [#allocation3], 1 }
 0x1bb   :  { %168 = vsyncpa [#allocation4], 1 }

</bundles_post_ra>
